<compile_context>
chip_gen: v7x
topology: tpu7x:2x2x1
jax: 0.10.0
libtpu: 0.0.40
codegen_flags: <defaults>
</compile_context>

<pallas_src>
import math

import jax
import jax.numpy as jnp
from jax import lax
from jax.experimental import pallas as pl
from jax.experimental.pallas import tpu as pltpu  # noqa: F401  (kept for TPU-specific params)

# ----------------------------- config (small) --------------------------------
B = 2          # batch
S = 8          # sequence length
H = 32         # hidden size
NH = 4         # attention heads
HD = H // NH   # head size
BS = B * S
LN_EPS = 1e-12
PADW = 128     # padded lane width for the fused QKV weight / packed vector slab (3*H=96 -> 128)


# ------------------------------- kernel --------------------------------------
def bert_attention_kernel(x_ref, mask_ref, wqkv_ref, wo_ref, vec_ref, out_ref):
    """Single invocation: the whole [B*S, H] problem is resident in VMEM."""
    x = x_ref[...]                                   # [BS, H] f32 (kept for the residual)
    xb = x.astype(jnp.bfloat16)
    vec = vec_ref[...]                               # [2, PADW] f32 packed vectors

    # ---- fused Q/K/V projection: one [BS,H] @ [H,128] bf16 MXU matmul (f32 acc) ----
    qkv = jnp.dot(xb, wqkv_ref[...], preferred_element_type=jnp.float32)   # [BS, PADW]
    qkv = qkv + vec[0:1, :]                          # packed [bq | bk | bv | 0] bias row

    scale = 1.0 / math.sqrt(HD)                      # fold 1/sqrt(HD) into q
    q3 = (qkv[:, 0:H] * scale).reshape(B, S, H).astype(jnp.bfloat16)
    k3 = qkv[:, H:2 * H].reshape(B, S, H).astype(jnp.bfloat16)
    v3 = qkv[:, 2 * H:3 * H].reshape(B, S, H).astype(jnp.bfloat16)

    # ---- per-head scores (batched over B), single masked softmax over ALL heads ----
    mask_b = jnp.broadcast_to(mask_ref[...], (B, NH * S, S))   # hoisted: one broadcast only
    sc = [jnp.einsum('bqd,bkd->bqk',
                     q3[:, :, h * HD:(h + 1) * HD],
                     k3[:, :, h * HD:(h + 1) * HD],
                     preferred_element_type=jnp.float32)       # [B, S, S] f32
          for h in range(NH)]
    s_all = jnp.concatenate(sc, axis=1) + mask_b               # [B, NH*S, S] (sublane concat)
    s_all = s_all - jnp.max(s_all, axis=-1, keepdims=True)
    p_all = jnp.exp(s_all)
    p_all = p_all * pl.reciprocal(jnp.sum(p_all, axis=-1, keepdims=True), approx=True)
    # TODO(synk): attention-probs dropout omitted (eval mode -> identity)

    # ---- context per head folded straight into the Wo contraction (no lane concat) ----
    wo = wo_ref[...]                                 # [H, H] bf16
    y = x + vec[1:2, 0:H]                            # residual + output bias (bo)
    for h in range(NH):                              # NH=4: static unroll, MXU has slack
        lo = h * HD
        p_h = p_all[:, h * S:(h + 1) * S, :].astype(jnp.bfloat16)        # [B, S, S]
        ctx_h = jnp.einsum('bqk,bkd->bqd', p_h, v3[:, :, lo:lo + HD],
                           preferred_element_type=jnp.float32)           # [B, S, HD]
        y = y + jnp.dot(ctx_h.reshape(BS, HD).astype(jnp.bfloat16),
                        wo[lo:lo + HD, :],
                        preferred_element_type=jnp.float32)              # [BS, H]

    gamma = vec[1:2, H:2 * H]
    beta = vec[1:2, 2 * H:3 * H]

    # ---- TF-style LayerNorm (two-pass variance, eps inside sqrt) ----
    u = jnp.mean(y, axis=-1, keepdims=True)
    d = y - u
    var = jnp.mean(d * d, axis=-1, keepdims=True)
    yn = d * lax.rsqrt(var + LN_EPS)
    out_ref[...] = (gamma * yn + beta).astype(out_ref.dtype)


# ------------------------------- wrapper --------------------------------------
def pack_params(params):
    """One-time packing OUTSIDE jit: fused bf16 QKV weight, bf16 Wo, f32 vector slab."""
    (wq_t, bq, wk_t, bk, wv_t, bv, wo_t, bo, gamma, beta) = params
    pad = PADW - 3 * H
    wqkv = jnp.concatenate([wq_t, wk_t, wv_t], axis=1)                     # [H, 3H]
    wqkv = jnp.pad(wqkv, ((0, 0), (0, pad))).astype(jnp.bfloat16)          # [H, 128] bf16
    row0 = jnp.pad(jnp.concatenate([bq, bk, bv], axis=1), ((0, 0), (0, pad)))
    row1 = jnp.pad(jnp.concatenate([bo, gamma, beta], axis=1), ((0, 0), (0, pad)))
    vecs = jnp.concatenate([row0, row1], axis=0).astype(jnp.float32)       # [2, 128] f32
    return wqkv, wo_t.astype(jnp.bfloat16), vecs


@jax.jit
def bert_attention(x, attention_mask, wqkv, wo, vecs):
    """x: [B,S,H] f32; attention_mask: [B,1,1,S] f32 additive (BERT style)."""
    x_flat = x.reshape(BS, H)                  # 2-D slab for the projections
    mask = attention_mask.reshape(B, 1, S)     # additive mask along k
    # NOTE: output last dim is 32 -> masked lane stores; acceptable at this toy size
    # (lane-dense re-slabbing only pays once B*S / H approach real BERT shapes).
    out_flat = pl.pallas_call(
        bert_attention_kernel,
        out_shape=jax.ShapeDtypeStruct((BS, H), x.dtype),
        # grid=() : whole problem resident in VMEM, pipeline overhead paid exactly once.
    )(x_flat, mask, wqkv, wo, vecs)
    return out_flat.reshape(B, S, H)


# --------------------------- pure-JAX reference --------------------------------
def bert_attention_ref(x, attention_mask, params):
    (wq_t, bq, wk_t, bk, wv_t, bv, wo_t, bo, gamma, beta) = params
    q = x @ wq_t + bq
    k = x @ wk_t + bk
    v = x @ wv_t + bv

    def split(t):  # [B,S,H] -> [B,NH,S,HD]
        return t.reshape(B, S, NH, HD).transpose(0, 2, 1, 3)

    qh, kh, vh = split(q), split(k), split(v)
    scores = jnp.einsum('bhqd,bhkd->bhqk', qh, kh) / math.sqrt(HD)
    scores = scores + attention_mask            # [B,1,1,S] broadcast
    probs = jax.nn.softmax(scores, axis=-1)
    ctx = jnp.einsum('bhqk,bhkd->bhqd', probs, vh)
    ctx = ctx.transpose(0, 2, 1, 3).reshape(B, S, H)

    y = ctx @ wo_t + bo + x
    u = y.mean(-1, keepdims=True)
    s2 = ((y - u) ** 2).mean(-1, keepdims=True)
    yn = (y - u) / jnp.sqrt(s2 + LN_EPS)
    return gamma * yn + beta


# --------------------------------- main ----------------------------------------
if __name__ == "__main__":
    key = jax.random.PRNGKey(0)
    keys = jax.random.split(key, 8)

    # deterministic synthetic parameters (weights stored pre-transposed: [in, out])
    wq_t = jax.random.normal(keys[0], (H, H), jnp.float32) * 0.05
    wk_t = jax.random.normal(keys[1], (H, H), jnp.float32) * 0.05
    wv_t = jax.random.normal(keys[2], (H, H), jnp.float32) * 0.05
    wo_t = jax.random.normal(keys[3], (H, H), jnp.float32) * 0.05
    bq = jax.random.normal(keys[4], (1, H), jnp.float32) * 0.01
    bk = jax.random.normal(keys[5], (1, H), jnp.float32) * 0.01
    bv = jax.random.normal(keys[6], (1, H), jnp.float32) * 0.01
    bo = jnp.zeros((1, H), jnp.float32)
    gamma = jnp.ones((1, H), jnp.float32)
    beta = jnp.zeros((1, H), jnp.float32)
    params = (wq_t, bq, wk_t, bk, wv_t, bv, wo_t, bo, gamma, beta)

    # inputs
    x = jax.random.normal(keys[7], (B, S, H), jnp.float32)
    # BERT-style additive mask: last two tokens of batch 1 are masked out
    mask2d = jnp.ones((B, S), jnp.float32).at[1, -2:].set(0.0)
    attention_mask = (1.0 - mask2d)[:, None, None, :] * -10000.0   # [B,1,1,S]

    # one-time parameter packing (kept outside jit; weights persist in bf16)
    wqkv, wo_packed, vecs = pack_params(params)

    out = jax.block_until_ready(bert_attention(x, attention_mask, wqkv, wo_packed, vecs))
    ref = bert_attention_ref(x, attention_mask, params)

    assert out.shape == (B, S, H)
    # bf16 matmul operands + EUP approx reciprocal => ~1e-3 abs error budget
    assert jnp.allclose(out, ref, atol=2e-2, rtol=2e-2), (
        "mismatch vs JAX reference (max abs diff "
        f"{float(jnp.max(jnp.abs(out - ref))):.3e})")

    print("KERNEL_OK")
</pallas_src>

<mosaic_0001>
module attributes {stable_mosaic.version = 11 : i64} {
  func.func @bert_attention_kernel(%arg0: memref<16x32xf32, #tpu.memory_space<vmem>>, %arg1: memref<2x1x8xf32, #tpu.memory_space<vmem>>, %arg2: memref<32x128xbf16, #tpu.memory_space<vmem>>, %arg3: memref<32x32xbf16, #tpu.memory_space<vmem>>, %arg4: memref<2x128xf32, #tpu.memory_space<vmem>>, %arg5: memref<16x32xf32, #tpu.memory_space<vmem>>) attributes {dimension_semantics = [], scalar_prefetch = 0 : i64, scratch_operands = 0 : i64, tpu.core_type = #tpu.core_type<tc>} {
    %c0 = arith.constant 0 : index
    %c0_0 = arith.constant 0 : index
    %0 = vector.load %arg0[%c0, %c0_0] : memref<16x32xf32, #tpu.memory_space<vmem>>, vector<16x32xf32>
    %1 = arith.truncf %0 : vector<16x32xf32> to vector<16x32xbf16>
    %c0_1 = arith.constant 0 : index
    %c0_2 = arith.constant 0 : index
    %2 = vector.load %arg4[%c0_1, %c0_2] : memref<2x128xf32, #tpu.memory_space<vmem>>, vector<2x128xf32>
    %c0_3 = arith.constant 0 : index
    %c0_4 = arith.constant 0 : index
    %3 = vector.load %arg2[%c0_3, %c0_4] : memref<32x128xbf16, #tpu.memory_space<vmem>>, vector<32x128xbf16>
    %cst = arith.constant dense<0.000000e+00> : vector<16x128xf32>
    %4 = tpu.matmul %1, %3, %cst {dimension_numbers = #tpu.dot_dimension_numbers<[1], [0], [0], [1], [0, 0, 1, 1], [], []>} : vector<16x32xbf16>, vector<32x128xbf16>, vector<16x128xf32> -> vector<16x128xf32>
    %5 = vector.extract_strided_slice %2 {offsets = [0, 0], sizes = [1, 128], strides = [1, 1]} : vector<2x128xf32> to vector<1x128xf32>
    %6 = vector.broadcast %5 : vector<1x128xf32> to vector<16x128xf32>
    %7 = arith.addf %4, %6 : vector<16x128xf32>
    %8 = vector.extract_strided_slice %7 {offsets = [0, 0], sizes = [16, 32], strides = [1, 1]} : vector<16x128xf32> to vector<16x32xf32>
    %cst_5 = arith.constant 0.353553385 : f32
    %9 = vector.broadcast %cst_5 : f32 to vector<16x32xf32>
    %10 = arith.mulf %8, %9 : vector<16x32xf32>
    %11 = vector.shape_cast %10 : vector<16x32xf32> to vector<2x8x32xf32>
    %12 = arith.truncf %11 : vector<2x8x32xf32> to vector<2x8x32xbf16>
    %13 = vector.extract_strided_slice %7 {offsets = [0, 32], sizes = [16, 32], strides = [1, 1]} : vector<16x128xf32> to vector<16x32xf32>
    %14 = vector.shape_cast %13 : vector<16x32xf32> to vector<2x8x32xf32>
    %15 = arith.truncf %14 : vector<2x8x32xf32> to vector<2x8x32xbf16>
    %16 = vector.extract_strided_slice %7 {offsets = [0, 64], sizes = [16, 32], strides = [1, 1]} : vector<16x128xf32> to vector<16x32xf32>
    %17 = vector.shape_cast %16 : vector<16x32xf32> to vector<2x8x32xf32>
    %18 = arith.truncf %17 : vector<2x8x32xf32> to vector<2x8x32xbf16>
    %c0_6 = arith.constant 0 : index
    %c0_7 = arith.constant 0 : index
    %c0_8 = arith.constant 0 : index
    %19 = vector.load %arg1[%c0_6, %c0_7, %c0_8] : memref<2x1x8xf32, #tpu.memory_space<vmem>>, vector<2x1x8xf32>
    %20 = vector.shape_cast %19 : vector<2x1x8xf32> to vector<2x1x8xf32>
    %21 = vector.broadcast %20 : vector<2x1x8xf32> to vector<2x32x8xf32>
    %22 = vector.extract_strided_slice %12 {offsets = [0, 0, 0], sizes = [2, 8, 8], strides = [1, 1, 1]} : vector<2x8x32xbf16> to vector<2x8x8xbf16>
    %23 = vector.extract_strided_slice %15 {offsets = [0, 0, 0], sizes = [2, 8, 8], strides = [1, 1, 1]} : vector<2x8x32xbf16> to vector<2x8x8xbf16>
    "tpu.trace_start"() <{level = 10 : i32, message = "bqd,bkd->bqk"}> : () -> ()
    %cst_9 = arith.constant dense<0.000000e+00> : vector<2x8x8xf32>
    %24 = tpu.matmul %22, %23, %cst_9 {dimension_numbers = #tpu.dot_dimension_numbers<[2], [2], [1], [1], [0, 0, 0, 1, 1, 1], [0], [0]>} : vector<2x8x8xbf16>, vector<2x8x8xbf16>, vector<2x8x8xf32> -> vector<2x8x8xf32>
    "tpu.trace_stop"() : () -> ()
    %25 = vector.extract_strided_slice %12 {offsets = [0, 0, 8], sizes = [2, 8, 8], strides = [1, 1, 1]} : vector<2x8x32xbf16> to vector<2x8x8xbf16>
    %26 = vector.extract_strided_slice %15 {offsets = [0, 0, 8], sizes = [2, 8, 8], strides = [1, 1, 1]} : vector<2x8x32xbf16> to vector<2x8x8xbf16>
    "tpu.trace_start"() <{level = 10 : i32, message = "bqd,bkd->bqk"}> : () -> ()
    %cst_10 = arith.constant dense<0.000000e+00> : vector<2x8x8xf32>
    %27 = tpu.matmul %25, %26, %cst_10 {dimension_numbers = #tpu.dot_dimension_numbers<[2], [2], [1], [1], [0, 0, 0, 1, 1, 1], [0], [0]>} : vector<2x8x8xbf16>, vector<2x8x8xbf16>, vector<2x8x8xf32> -> vector<2x8x8xf32>
    "tpu.trace_stop"() : () -> ()
    %28 = vector.extract_strided_slice %12 {offsets = [0, 0, 16], sizes = [2, 8, 8], strides = [1, 1, 1]} : vector<2x8x32xbf16> to vector<2x8x8xbf16>
    %29 = vector.extract_strided_slice %15 {offsets = [0, 0, 16], sizes = [2, 8, 8], strides = [1, 1, 1]} : vector<2x8x32xbf16> to vector<2x8x8xbf16>
    "tpu.trace_start"() <{level = 10 : i32, message = "bqd,bkd->bqk"}> : () -> ()
    %cst_11 = arith.constant dense<0.000000e+00> : vector<2x8x8xf32>
    %30 = tpu.matmul %28, %29, %cst_11 {dimension_numbers = #tpu.dot_dimension_numbers<[2], [2], [1], [1], [0, 0, 0, 1, 1, 1], [0], [0]>} : vector<2x8x8xbf16>, vector<2x8x8xbf16>, vector<2x8x8xf32> -> vector<2x8x8xf32>
    "tpu.trace_stop"() : () -> ()
    %31 = vector.extract_strided_slice %12 {offsets = [0, 0, 24], sizes = [2, 8, 8], strides = [1, 1, 1]} : vector<2x8x32xbf16> to vector<2x8x8xbf16>
    %32 = vector.extract_strided_slice %15 {offsets = [0, 0, 24], sizes = [2, 8, 8], strides = [1, 1, 1]} : vector<2x8x32xbf16> to vector<2x8x8xbf16>
    "tpu.trace_start"() <{level = 10 : i32, message = "bqd,bkd->bqk"}> : () -> ()
    %cst_12 = arith.constant dense<0.000000e+00> : vector<2x8x8xf32>
    %33 = tpu.matmul %31, %32, %cst_12 {dimension_numbers = #tpu.dot_dimension_numbers<[2], [2], [1], [1], [0, 0, 0, 1, 1, 1], [0], [0]>} : vector<2x8x8xbf16>, vector<2x8x8xbf16>, vector<2x8x8xf32> -> vector<2x8x8xf32>
    "tpu.trace_stop"() : () -> ()
    %34 = tpu.concatenate %24, %27, %30, %33 in 1 : vector<2x8x8xf32>, vector<2x8x8xf32>, vector<2x8x8xf32>, vector<2x8x8xf32> -> vector<2x32x8xf32>
    %35 = arith.addf %34, %21 : vector<2x32x8xf32>
    %cst_13 = arith.constant dense<0xFF800000> : vector<2x32xf32>
    %36 = vector.multi_reduction <maximumf>, %35, %cst_13 [2] : vector<2x32x8xf32> to vector<2x32xf32>
    %37 = vector.shape_cast %36 : vector<2x32xf32> to vector<2x32x1xf32>
    %38 = vector.broadcast %37 : vector<2x32x1xf32> to vector<2x32x8xf32>
    %39 = arith.subf %35, %38 : vector<2x32x8xf32>
    %40 = math.exp %39 : vector<2x32x8xf32>
    %cst_14 = arith.constant dense<0.000000e+00> : vector<2x32xf32>
    %41 = vector.multi_reduction <add>, %40, %cst_14 [2] : vector<2x32x8xf32> to vector<2x32xf32>
    %42 = vector.shape_cast %41 : vector<2x32xf32> to vector<2x32x1xf32>
    %43 = tpu.reciprocal %42 {approx = true} : vector<2x32x1xf32> -> vector<2x32x1xf32>
    %44 = vector.broadcast %43 : vector<2x32x1xf32> to vector<2x32x8xf32>
    %45 = arith.mulf %40, %44 : vector<2x32x8xf32>
    %c0_15 = arith.constant 0 : index
    %c0_16 = arith.constant 0 : index
    %46 = vector.load %arg3[%c0_15, %c0_16] : memref<32x32xbf16, #tpu.memory_space<vmem>>, vector<32x32xbf16>
    %47 = vector.extract_strided_slice %2 {offsets = [1, 0], sizes = [1, 32], strides = [1, 1]} : vector<2x128xf32> to vector<1x32xf32>
    %48 = vector.broadcast %47 : vector<1x32xf32> to vector<16x32xf32>
    %49 = arith.addf %0, %48 : vector<16x32xf32>
    %50 = vector.extract_strided_slice %45 {offsets = [0, 0, 0], sizes = [2, 8, 8], strides = [1, 1, 1]} : vector<2x32x8xf32> to vector<2x8x8xf32>
    %51 = arith.truncf %50 : vector<2x8x8xf32> to vector<2x8x8xbf16>
    %52 = vector.extract_strided_slice %18 {offsets = [0, 0, 0], sizes = [2, 8, 8], strides = [1, 1, 1]} : vector<2x8x32xbf16> to vector<2x8x8xbf16>
    "tpu.trace_start"() <{level = 10 : i32, message = "bqk,bkd->bqd"}> : () -> ()
    %cst_17 = arith.constant dense<0.000000e+00> : vector<2x8x8xf32>
    %53 = tpu.matmul %51, %52, %cst_17 {dimension_numbers = #tpu.dot_dimension_numbers<[2], [1], [1], [2], [0, 0, 0, 1, 1, 2], [0], [0]>} : vector<2x8x8xbf16>, vector<2x8x8xbf16>, vector<2x8x8xf32> -> vector<2x8x8xf32>
    "tpu.trace_stop"() : () -> ()
    %54 = vector.shape_cast %53 : vector<2x8x8xf32> to vector<16x8xf32>
    %55 = arith.truncf %54 : vector<16x8xf32> to vector<16x8xbf16>
    %56 = vector.extract_strided_slice %46 {offsets = [0, 0], sizes = [8, 32], strides = [1, 1]} : vector<32x32xbf16> to vector<8x32xbf16>
    %cst_18 = arith.constant dense<0.000000e+00> : vector<16x32xf32>
    %57 = tpu.matmul %55, %56, %cst_18 {dimension_numbers = #tpu.dot_dimension_numbers<[1], [0], [0], [1], [0, 0, 1, 1], [], []>} : vector<16x8xbf16>, vector<8x32xbf16>, vector<16x32xf32> -> vector<16x32xf32>
    %58 = arith.addf %49, %57 : vector<16x32xf32>
    %59 = vector.extract_strided_slice %45 {offsets = [0, 8, 0], sizes = [2, 8, 8], strides = [1, 1, 1]} : vector<2x32x8xf32> to vector<2x8x8xf32>
    %60 = arith.truncf %59 : vector<2x8x8xf32> to vector<2x8x8xbf16>
    %61 = vector.extract_strided_slice %18 {offsets = [0, 0, 8], sizes = [2, 8, 8], strides = [1, 1, 1]} : vector<2x8x32xbf16> to vector<2x8x8xbf16>
    "tpu.trace_start"() <{level = 10 : i32, message = "bqk,bkd->bqd"}> : () -> ()
    %cst_19 = arith.constant dense<0.000000e+00> : vector<2x8x8xf32>
    %62 = tpu.matmul %60, %61, %cst_19 {dimension_numbers = #tpu.dot_dimension_numbers<[2], [1], [1], [2], [0, 0, 0, 1, 1, 2], [0], [0]>} : vector<2x8x8xbf16>, vector<2x8x8xbf16>, vector<2x8x8xf32> -> vector<2x8x8xf32>
    "tpu.trace_stop"() : () -> ()
    %63 = vector.shape_cast %62 : vector<2x8x8xf32> to vector<16x8xf32>
    %64 = arith.truncf %63 : vector<16x8xf32> to vector<16x8xbf16>
    %65 = vector.extract_strided_slice %46 {offsets = [8, 0], sizes = [8, 32], strides = [1, 1]} : vector<32x32xbf16> to vector<8x32xbf16>
    %cst_20 = arith.constant dense<0.000000e+00> : vector<16x32xf32>
    %66 = tpu.matmul %64, %65, %cst_20 {dimension_numbers = #tpu.dot_dimension_numbers<[1], [0], [0], [1], [0, 0, 1, 1], [], []>} : vector<16x8xbf16>, vector<8x32xbf16>, vector<16x32xf32> -> vector<16x32xf32>
    %67 = arith.addf %58, %66 : vector<16x32xf32>
    %68 = vector.extract_strided_slice %45 {offsets = [0, 16, 0], sizes = [2, 8, 8], strides = [1, 1, 1]} : vector<2x32x8xf32> to vector<2x8x8xf32>
    %69 = arith.truncf %68 : vector<2x8x8xf32> to vector<2x8x8xbf16>
    %70 = vector.extract_strided_slice %18 {offsets = [0, 0, 16], sizes = [2, 8, 8], strides = [1, 1, 1]} : vector<2x8x32xbf16> to vector<2x8x8xbf16>
    "tpu.trace_start"() <{level = 10 : i32, message = "bqk,bkd->bqd"}> : () -> ()
    %cst_21 = arith.constant dense<0.000000e+00> : vector<2x8x8xf32>
    %71 = tpu.matmul %69, %70, %cst_21 {dimension_numbers = #tpu.dot_dimension_numbers<[2], [1], [1], [2], [0, 0, 0, 1, 1, 2], [0], [0]>} : vector<2x8x8xbf16>, vector<2x8x8xbf16>, vector<2x8x8xf32> -> vector<2x8x8xf32>
    "tpu.trace_stop"() : () -> ()
    %72 = vector.shape_cast %71 : vector<2x8x8xf32> to vector<16x8xf32>
    %73 = arith.truncf %72 : vector<16x8xf32> to vector<16x8xbf16>
    %74 = vector.extract_strided_slice %46 {offsets = [16, 0], sizes = [8, 32], strides = [1, 1]} : vector<32x32xbf16> to vector<8x32xbf16>
    %cst_22 = arith.constant dense<0.000000e+00> : vector<16x32xf32>
    %75 = tpu.matmul %73, %74, %cst_22 {dimension_numbers = #tpu.dot_dimension_numbers<[1], [0], [0], [1], [0, 0, 1, 1], [], []>} : vector<16x8xbf16>, vector<8x32xbf16>, vector<16x32xf32> -> vector<16x32xf32>
    %76 = arith.addf %67, %75 : vector<16x32xf32>
    %77 = vector.extract_strided_slice %45 {offsets = [0, 24, 0], sizes = [2, 8, 8], strides = [1, 1, 1]} : vector<2x32x8xf32> to vector<2x8x8xf32>
    %78 = arith.truncf %77 : vector<2x8x8xf32> to vector<2x8x8xbf16>
    %79 = vector.extract_strided_slice %18 {offsets = [0, 0, 24], sizes = [2, 8, 8], strides = [1, 1, 1]} : vector<2x8x32xbf16> to vector<2x8x8xbf16>
    "tpu.trace_start"() <{level = 10 : i32, message = "bqk,bkd->bqd"}> : () -> ()
    %cst_23 = arith.constant dense<0.000000e+00> : vector<2x8x8xf32>
    %80 = tpu.matmul %78, %79, %cst_23 {dimension_numbers = #tpu.dot_dimension_numbers<[2], [1], [1], [2], [0, 0, 0, 1, 1, 2], [0], [0]>} : vector<2x8x8xbf16>, vector<2x8x8xbf16>, vector<2x8x8xf32> -> vector<2x8x8xf32>
    "tpu.trace_stop"() : () -> ()
    %81 = vector.shape_cast %80 : vector<2x8x8xf32> to vector<16x8xf32>
    %82 = arith.truncf %81 : vector<16x8xf32> to vector<16x8xbf16>
    %83 = vector.extract_strided_slice %46 {offsets = [24, 0], sizes = [8, 32], strides = [1, 1]} : vector<32x32xbf16> to vector<8x32xbf16>
    %cst_24 = arith.constant dense<0.000000e+00> : vector<16x32xf32>
    %84 = tpu.matmul %82, %83, %cst_24 {dimension_numbers = #tpu.dot_dimension_numbers<[1], [0], [0], [1], [0, 0, 1, 1], [], []>} : vector<16x8xbf16>, vector<8x32xbf16>, vector<16x32xf32> -> vector<16x32xf32>
    %85 = arith.addf %76, %84 : vector<16x32xf32>
    %86 = vector.extract_strided_slice %2 {offsets = [1, 32], sizes = [1, 32], strides = [1, 1]} : vector<2x128xf32> to vector<1x32xf32>
    %87 = vector.extract_strided_slice %2 {offsets = [1, 64], sizes = [1, 32], strides = [1, 1]} : vector<2x128xf32> to vector<1x32xf32>
    %cst_25 = arith.constant dense<0.000000e+00> : vector<16xf32>
    %88 = vector.multi_reduction <add>, %85, %cst_25 [1] : vector<16x32xf32> to vector<16xf32>
    %89 = vector.shape_cast %88 : vector<16xf32> to vector<16x1xf32>
    %cst_26 = arith.constant 3.200000e+01 : f32
    %90 = vector.broadcast %cst_26 : f32 to vector<16x1xf32>
    %91 = arith.divf %89, %90 : vector<16x1xf32>
    %92 = vector.broadcast %91 : vector<16x1xf32> to vector<16x32xf32>
    %93 = arith.subf %85, %92 : vector<16x32xf32>
    %94 = arith.mulf %93, %93 : vector<16x32xf32>
    %cst_27 = arith.constant dense<0.000000e+00> : vector<16xf32>
    %95 = vector.multi_reduction <add>, %94, %cst_27 [1] : vector<16x32xf32> to vector<16xf32>
    %96 = vector.shape_cast %95 : vector<16xf32> to vector<16x1xf32>
    %cst_28 = arith.constant 3.200000e+01 : f32
    %97 = vector.broadcast %cst_28 : f32 to vector<16x1xf32>
    %98 = arith.divf %96, %97 : vector<16x1xf32>
    %cst_29 = arith.constant 9.99999996E-13 : f32
    %99 = vector.broadcast %cst_29 : f32 to vector<16x1xf32>
    %100 = arith.addf %98, %99 : vector<16x1xf32>
    %101 = math.rsqrt %100 : vector<16x1xf32>
    %102 = vector.broadcast %101 : vector<16x1xf32> to vector<16x32xf32>
    %103 = arith.mulf %93, %102 : vector<16x32xf32>
    %104 = vector.broadcast %86 : vector<1x32xf32> to vector<16x32xf32>
    %105 = arith.mulf %104, %103 : vector<16x32xf32>
    %106 = vector.broadcast %87 : vector<1x32xf32> to vector<16x32xf32>
    %107 = arith.addf %105, %106 : vector<16x32xf32>
    %c0_30 = arith.constant 0 : index
    %c0_31 = arith.constant 0 : index
    %108 = vector.load %arg5[%c0_30, %c0_31] : memref<16x32xf32, #tpu.memory_space<vmem>>, vector<16x32xf32>
    tpu.vector_store %arg5[%c0_30, %c0_31], %107 {strides = array<i32>} : memref<16x32xf32, #tpu.memory_space<vmem>>, vector<16x32xf32>,
    return
  }
}

</mosaic_0001>

<bundles_post_ra>
// kernel: bert_attention.1
= control target key start
LH: loop header
LB: loop body
LE: loop exit
PB: predicated region body
PF: predicated region fallthrough
CT: control target
= control target key end

     0   :  { %10 = vsyncpa [#allocation3], 0  ;;  %s1982_s0 = inlined_call_operand.hbm [shape: f32[16,32], index: 0, kind: input, shape index: {}]   ;;  %s1983_s1 = inlined_call_operand.vmem [shape: f32[2,1,8], index: 1, kind: input, shape index: {}]   ;;  %s1984_s2 = inlined_call_operand.hbm [shape: bf16[32,128], index: 2, kind: input, shape index: {}]   ;;  %s1985_s3 = inlined_call_operand.vmem [shape: bf16[32,32], index: 3, kind: input, shape index: {}]   ;;  %s1986_s4 = inlined_call_operand.vmem [shape: f32[2,128], index: 4, kind: input, shape index: {}]   ;;  %s1987_s5 = inlined_call_operand.hbm [shape: f32[16,32], index: 5, kind: output, shape index: {}]  }
   0x1   :  { %11 = vsyncpa [#allocation6], 0 }
   0x2   :  { %12 = vsyncpa [#allocation4], 0  ;;  %s1650_s18 = smov [#allocation2]   ;;  %s1578_s22 = scalar_lea.hbm %s1982_s0, 256 }
   0x3   :  { %s18_s19 = sshll.u32 %s1650_s18, 4  ;;  %p1579_p0 = scmp.ne.s32.totalorder %s1982_s0, %s1578_s22  ;;  %s19_s19 = int_to_ptr.vmem [resolvable:$true] %s18_s19 }
   0x4   :  { %p1582_p1 = scmp.lt.u32.totalorder %s1578_s22, %s1982_s0 }
   0x6   :  { %p1584_p2 = pnand %p1582_p1, %p1579_p0 }
   0x8   :  { %1587 = shalt.err (!%p1584_p2)
}
   0x9   :  { %s1588_s27 = scalar_lea.vmem %s19_s19, 256  ;;  %p1593_p4 = scmp.lt.s32.totalorder %s19_s19, %s19_s19 }
   0xa   :  { %p1589_p3 = scmp.ne.s32.totalorder %s19_s19, %s1588_s27  ;;  %p1594_p5 = scmp.lt.s32.totalorder %s1588_s27, %s1588_s27 }
   0xc   :  { %p1595_p6 = por %p1594_p5, %p1593_p4 }
   0xe   :  { %p1596_p7 = pnand %p1595_p6, %p1589_p3 }
  0x10   :  { %1599 = shalt.err (!%p1596_p7)
}
  0x11   :  { %s1651_s28 = smov 128   ;;  %s1652_s29 = smov 8  }
  0x12   :  { %24 = dma.hbm_to_vmem [thread:$0]  %s1982_s0, 256, %s19_s19, [#allocation3], %s1651_s28, %s1651_s28, %s1652_s29  }
  0x13   :  { %s1653_s7 = smov [#allocation5]   ;;  %s1600_s11 = scalar_lea.hbm %s1984_s2, 256 }
  0x14   :  { %s32_s8 = sshll.u32 %s1653_s7, 4  ;;  %p1601_p8 = scmp.ne.s32.totalorder %s1984_s2, %s1600_s11  ;;  %s33_s8 = int_to_ptr.vmem [resolvable:$true] %s32_s8 }
  0x15   :  { %p1604_p9 = scmp.lt.u32.totalorder %s1600_s11, %s1984_s2 }
  0x17   :  { %p1606_p10 = pnand %p1604_p9, %p1601_p8 }
  0x19   :  { %1609 = shalt.err (!%p1606_p10)
}
  0x1a   :  { %s1610_s16 = scalar_lea.vmem %s33_s8, 256  ;;  %p1615_p12 = scmp.lt.s32.totalorder %s33_s8, %s33_s8 }
  0x1b   :  { %p1611_p11 = scmp.ne.s32.totalorder %s33_s8, %s1610_s16  ;;  %p1616_p13 = scmp.lt.s32.totalorder %s1610_s16, %s1610_s16 }
  0x1d   :  { %p1617_p0 = por %p1616_p13, %p1615_p12 }
  0x1f   :  { %p1618_p1 = pnand %p1617_p0, %p1611_p11 }
  0x21   :  { %1621 = shalt.err (!%p1618_p1)
}
  0x22   :  { %s1654_s0 = smov 64   ;;  %s1655_s17 = smov 4  }
  0x23   :  { %38 = dma.hbm_to_vmem [thread:$0]  %s1984_s2, 256, %s33_s8, [#allocation6], %s1654_s0, %s1654_s0, %s1655_s17  }
  0x24   :  { %1644 = dma.done.wait [#allocation3], 256  }
  0x25   :  { %1645 = vsyncadd [#allocation3], 4294967040 }
  0x26   :  { %1646 = dma.done.wait [#allocation6], 256  }
  0x27   :  { %1647 = vsyncadd [#allocation6], 4294967040  ;;  %v1656_v0 = vmov 0.0   ;;  %vm1657_vm0 = vmmov 0   ;;  %v1540_v1 = vld [vmem:[#allocation5] sm:$0xff]   ;;  %v1541_v2 = vld [vmem:[#allocation5 + $0x8] sm:$0xff]   ;;  %v58_v6 = vlaneseq }
  0x28   :  { %1378 = vmatprep.subr.bf16.mxu0 %v1656_v0  ;;  %1382 = vmatprep.mubr.msk.bf16.mxu0 %vm1657_vm0, %v1656_v0  ;;  %v1735_v3 = vld [vmem:[#allocation2] sm:$0xff]  ;;  %v1737_v4 = vld [vmem:[#allocation2 + $0x8] sm:$0xff]  ;;  %vm74_vm1 = vcmask 261120   ;;  %s1658_s21 = smov 88   ;;  %s1659_s22 = smov 96   ;;  %vm142_vm2 = vcmask 64512  }
  0x29   :  { %1386 = vmatprep.subr.bf16.mxu1 %v1656_v0  ;;  %1388 = vmatprep.mubr.msk.bf16.mxu1 %vm1657_vm0, %v1656_v0  ;;  %v52_v5 = vpack.c.bf16 %v1737_v4, %v1735_v3  ;;  %v1746_v7 = vshrl.u32 %v58_v6, 7  ;;  %v1752_v9 = vld [vmem:[%s1986_s4] sm:$0x3]  ;;  %s1660_s4 = smov 80   ;;  %s1661_s23 = smov 120   ;;  %vm653_vm3 = vcmask 1043456  }
  0x2a   :  { %1379 = vmatpush3.bf16.msra.mxu0 %v1540_v1  ;;  %s1662_s24 = smov 112   ;;  %v1810_v39 = vld [vmem:[%s1983_s1] ss:$0 sm:$0xff]  ;;  %v1816_v44 = vld [vmem:[%s1983_s1 + $0x1] ss:$0 sm:$0xff]  ;;  %s1663_s1 = smov 72  }
  0x2b   :  { %1380 = vmatprep.subr.bf16.mxu0 %v1656_v0  ;;  %v60_v8 = vsub.s32 0, %v1746_v7  ;;  %s1664_s6 = smov 104   ;;  %s1665_s7 = smov 56  }
  0x2c   :  { %s1666_s8 = smov 48   ;;  %s1667_s11 = smov 40  }
  0x2d   :  { %v61_v10 = vrot.slane %v1752_v9, %v60_v8  ;;  %s1669_s17 = smov [#allocation7]  }
  0x2e   :  { %1381 = vmatpush3.bf16.msra.mxu0 %v1541_v2  ;;  %s1297_s18 = sshll.u32 %s1669_s17, 4  ;;  %s1298_s18 = int_to_ptr.vmem [resolvable:$true] %s1297_s18 }
  0x2f   :  { %1392 = vmatprep.subr.bf16.mxu0 %v1656_v0  ;;  %s1622_s19 = scalar_lea.vmem %s1298_s18, 256  ;;  %p1627_p3 = scmp.lt.s32.totalorder %s1298_s18, %s1298_s18 }
  0x30   :  { %p1623_p2 = scmp.ne.s32.totalorder %s1298_s18, %s1622_s19  ;;  %p1628_p4 = scmp.lt.s32.totalorder %s1622_s19, %s1622_s19 }
  0x31   :  { %1383 = vmatmul.mubr.msk.bf16.vlgmr.msra.gmra.mrb[0].mxu0 %vm74_vm1, %v52_v5 }
  0x32   :  { %1394 = vmatprep.mubr.msk.bf16.mxu0 %vm1657_vm0, %v1656_v0  ;;  %p1629_p5 = por %p1628_p4, %p1627_p3 }
  0x34   :  { %p1630_p6 = pnand %p1629_p5, %p1623_p2 }
 0x104   :  { %v112_v11 = vpop.f32.mrb[0].mxu0 }
 0x105   :  { %v113_v12 = vadd.f32 %v112_v11, %v61_v10  ;;  %v1384_v13 = vpop.f32.mrb[1].mxu0 }
 0x106   :  { %v115_v14 = vpop.f32.mrb[2].mxu0 }
 0x107   :  { %v1755_v15 = vpack.c.bf16 %v113_v12, %v113_v12  ;;  %v116_v16 = vadd.f32 %v115_v14, %v61_v10  ;;  %v1385_v17 = vpop.f32.mrb[3].mxu0  ;;  %v119_v18 = vmul.f32 0.35355338, %v113_v12 }
 0x109   :  { %241 = vrot.lane.b32.xlu1 %v1755_v15, %s1658_s21  ;;  %140 = vrot.lane.b32.xlu0 %v1755_v15, %s1659_s22  ;;  %v1760_v19 = vpack.c.bf16 %v116_v16, %v116_v16  ;;  %v1765_v20 = vpack.c.bf16 %v119_v18, %v119_v18  ;;  %v120_v21 = vmul.f32 0.35355338, %v116_v16 }
 0x10b   :  { %v1769_v22 = vpack.c.bf16 %v120_v21, %v120_v21 }
 0x10d   :  { %292 = vrot.lane.b32.xlu1 %v1760_v19, %s1658_s21  ;;  %190 = vrot.lane.b32.xlu0 %v1760_v19, %s1659_s22 }
 0x111   :  { %342 = vrot.lane.b32.xlu1 %v1755_v15, %s1660_s4  ;;  %239 = vrot.lane.b32.xlu0 %v1765_v20, %s1661_s23 }
 0x115   :  { %340 = vrot.lane.b32.xlu1 %v1765_v20, %s1662_s24  ;;  %290 = vrot.lane.b32.xlu0 %v1769_v22, %s1661_s23 }
 0x119   :  { %390 = vrot.lane.b32.xlu1 %v1769_v22, %s1662_s24  ;;  %392 = vrot.lane.b32.xlu0 %v1760_v19, %s1660_s4 }
 0x17b   :  { %v141_v23 = vpop.permute.xlu0 %140  ;;  %v242_v25 = vpop.permute.xlu1 %241 }
 0x17c   :  { %v147_v24 = vsel %vm142_vm2, %v141_v23, 0  ;;  %v247_v30 = vsel %vm142_vm2, %v242_v25, 0 }
 0x17d   :  { %1387 = vmatpush3.bf16.xpose.msra.mxu1 %v147_v24 }
 0x17e   :  { %1398 = vmatprep.subr.bf16.mxu1 %v1656_v0 }
 0x17f   :  { %v191_v26 = vpop.permute.xlu0 %190  ;;  %v293_v28 = vpop.permute.xlu1 %292 }
 0x180   :  { %v196_v27 = vsel %vm142_vm2, %v191_v26, 0  ;;  %v298_v32 = vsel %vm142_vm2, %v293_v28, 0 }
 0x181   :  { %1393 = vmatpush3.bf16.xpose.msra.mxu0 %v196_v27 }
 0x182   :  { %1404 = vmatprep.subr.bf16.mxu0 %v1656_v0 }
 0x183   :  { %v240_v29 = vpop.permute.xlu0 %239  ;;  %v343_v33 = vpop.permute.xlu1 %342 }
 0x184   :  { %1389 = vmatmul.mubr.msk.bf16.vlgmr.msra.gmra.mrb[0].mxu1 %vm142_vm2, %v1765_v20  ;;  %v348_v34 = vsel %vm142_vm2, %v343_v33, 0 }
 0x185   :  { %1399 = vmatpush3.bf16.xpose.msra.mxu1 %v247_v30  ;;  %1400 = vmatprep.mubr.msk.bf16.mxu1 %vm1657_vm0, %v1656_v0 }
 0x186   :  { %1410 = vmatprep.subr.bf16.mxu1 %v1656_v0 }
 0x187   :  { %v291_v31 = vpop.permute.xlu0 %290  ;;  %v341_v37 = vpop.permute.xlu1 %340 }
 0x188   :  { %1395 = vmatmul.mubr.msk.bf16.vlgmr.msra.gmra.mrb[4].mxu0 %vm142_vm2, %v1769_v22 }
 0x189   :  { %1405 = vmatpush3.bf16.xpose.msra.mxu0 %v298_v32  ;;  %1406 = vmatprep.mubr.msk.bf16.mxu0 %vm1657_vm0, %v1656_v0 }
 0x18a   :  { %1416 = vmatprep.subr.bf16.mxu0 %v1656_v0 }
 0x18b   :  { %v393_v35 = vpop.permute.xlu0 %392  ;;  %v391_v38 = vpop.permute.xlu1 %390 }
 0x18c   :  { %1401 = vmatmul.mubr.msk.bf16.vlgmr.msra.gmra.mrb[4].mxu1 %vm142_vm2, %v240_v29  ;;  %v398_v36 = vsel %vm142_vm2, %v393_v35, 0 }
 0x18d   :  { %1411 = vmatpush3.bf16.xpose.msra.mxu1 %v348_v34  ;;  %1412 = vmatprep.mubr.msk.bf16.mxu1 %vm1657_vm0, %v1656_v0 }
 0x18e   :  { %1422 = vmatprep.subr.bf16.mxu1 %v1656_v0 }
 0x190   :  { %1407 = vmatmul.mubr.msk.bf16.vlgmr.msra.gmra.mrb[8].mxu0 %vm142_vm2, %v291_v31 }
 0x191   :  { %1417 = vmatpush3.bf16.xpose.msra.mxu0 %v398_v36  ;;  %1418 = vmatprep.mubr.msk.bf16.mxu0 %vm1657_vm0, %v1656_v0 }
 0x192   :  { %1428 = vmatprep.subr.bf16.mxu0 %v1656_v0 }
 0x194   :  { %1413 = vmatmul.mubr.msk.bf16.vlgmr.msra.gmra.mrb[8].mxu1 %vm142_vm2, %v341_v37 }
 0x195   :  { %1424 = vmatprep.mubr.msk.bf16.mxu1 %vm1657_vm0, %v1656_v0 }
 0x198   :  { %1419 = vmatmul.mubr.msk.bf16.vlgmr.msra.gmra.mrb[12].mxu0 %vm142_vm2, %v391_v38 }
 0x199   :  { %1430 = vmatprep.mubr.msk.bf16.mxu0 %vm1657_vm0, %v1656_v0 }
 0x257   :  { %v183_v40 = vpop.f32.mrb[0].mxu1 }
 0x258   :  { %v540_v41 = vadd.f32 %v1810_v39, %v183_v40  ;;  %v1390_v42 = vpop.f32.mrb[1].mxu1 }
 0x259   :  { %v186_v43 = vpop.f32.mrb[2].mxu1 }
 0x25a   :  { %v1391_v45 = vpop.f32.mrb[3].mxu1  ;;  %v548_v46 = vsel %vm142_vm2, %v540_v41, -inf }
 0x25b   :  { %549 = vmax.xlane.f32.xlu0 %v548_v46  ;;  %v232_v47 = vpop.f32.mrb[4].mxu0 }
 0x25c   :  { %v544_v48 = vadd.f32 %v1816_v44, %v232_v47  ;;  %v1396_v49 = vpop.f32.mrb[5].mxu0 }
 0x25d   :  { %v235_v50 = vpop.f32.mrb[6].mxu0 }
 0x25e   :  { %v1397_v51 = vpop.f32.mrb[7].mxu0  ;;  %v560_v52 = vsel %vm142_vm2, %v544_v48, -inf }
 0x25f   :  { %v1821_v53 = vpop.f32.mrb[4].mxu1  ;;  %561 = vmax.xlane.f32.xlu1 %v560_v52 }
 0x260   :  { %v1402_v54 = vpop.f32.mrb[5].mxu1  ;;  %v541_v32 = vadd.f32 %v1810_v39, %v1821_v53 }
 0x261   :  { %v286_v55 = vpop.f32.mrb[6].mxu1 }
 0x262   :  { %v1403_v56 = vpop.f32.mrb[7].mxu1  ;;  %v551_v37 = vsel %vm142_vm2, %v541_v32, -inf }
 0x263   :  { %v334_v57 = vpop.f32.mrb[8].mxu0 }
 0x264   :  { %v1408_v58 = vpop.f32.mrb[9].mxu0  ;;  %v545_v10 = vadd.f32 %v1816_v44, %v334_v57 }
 0x265   :  { %v337_v59 = vpop.f32.mrb[10].mxu0 }
 0x266   :  { %v1409_v60 = vpop.f32.mrb[11].mxu0  ;;  %v563_v11 = vsel %vm142_vm2, %v545_v10, -inf }
 0x267   :  { %v384_v61 = vpop.f32.mrb[8].mxu1 }
 0x268   :  { %v1414_v62 = vpop.f32.mrb[9].mxu1  ;;  %v542_v36 = vadd.f32 %v1810_v39, %v384_v61 }
 0x269   :  { %v387_v63 = vpop.f32.mrb[10].mxu1 }
 0x26a   :  { %v1415_v1 = vpop.f32.mrb[11].mxu1  ;;  %v554_v40 = vsel %vm142_vm2, %v542_v36, -inf }
 0x26b   :  { %v434_v2 = vpop.f32.mrb[12].mxu0 }
 0x26c   :  { %v1420_v5 = vpop.f32.mrb[13].mxu0  ;;  %v546_v38 = vadd.f32 %v1816_v44, %v434_v2 }
 0x26d   :  { %v437_v6 = vpop.f32.mrb[14].mxu0 }
 0x26e   :  { %v1421_v8 = vpop.f32.mrb[15].mxu0 }
 0x270   :  { %442 = vrot.lane.b32.xlu1 %v1755_v15, %s1663_s1 }
 0x271   :  { %492 = vrot.lane.b32.xlu0 %v1760_v19, %s1663_s1 }
 0x274   :  { %440 = vrot.lane.b32.xlu1 %v1765_v20, %s1664_s6 }
 0x278   :  { %490 = vrot.lane.b32.xlu1 %v1769_v22, %s1664_s6 }
 0x27c   :  { %697 = vrot.lane.b32.xlu1 %v1760_v19, %s1654_s0 }
 0x2a0   :  { %564 = vmax.xlane.f32.xlu1 %v563_v11 }
 0x2b1   :  { %797 = vrot.lane.b32.xlu1 %v1755_v15, %s1665_s7 }
 0x2e8   :  { %v550_v12 = vpop.xlane.xlu0 %549 }
 0x2e9   :  { %v572_v13 = vsub.f32 %v540_v41, %v550_v12  ;;  %v566_v41 = vsel %vm142_vm2, %v546_v38, -inf }
 0x2eb   :  { %v580_v14 = vmul.f32 1.442695, %v572_v13 }
 0x2ec   :  { %v493_v16 = vpop.permute.xlu0 %492  ;;  %v562_v17 = vpop.xlane.xlu1 %561 }
 0x2ed   :  { %1542 = vpow2.f32 %v580_v14  ;;  %v498_v18 = vsel %vm142_vm2, %v493_v16, 0  ;;  %v576_v20 = vsub.f32 %v544_v48, %v562_v17 }
 0x2ee   :  { %1429 = vmatpush3.bf16.xpose.msra.mxu0 %v498_v18 }
 0x2ef   :  { %v588_v21 = vmul.f32 1.442695, %v576_v20  ;;  %1440 = vmatprep.subr.bf16.mxu0 %v1656_v0 }
 0x2f0   :  { %v443_v22 = vpop.permute.xlu1 %442 }
 0x2f1   :  { %1544 = vpow2.f32 %v588_v21  ;;  %v448_v23 = vsel %vm142_vm2, %v443_v22, 0 }
 0x2f2   :  { %1423 = vmatpush3.bf16.xpose.msra.mxu1 %v448_v23  ;;  %v636_v23 = vld [vmem:[%s1985_s3] sm:$0xf] }
 0x2f3   :  { %1434 = vmatprep.subr.bf16.mxu1 %v1656_v0 }
 0x2f4   :  { %v441_v24 = vpop.permute.xlu1 %440 }
 0x2f7   :  { %v1543_v25 = vpop.eup %1542 }
 0x2f8   :  { %v491_v26 = vpop.permute.xlu1 %490  ;;  %v596_v27 = vsel %vm142_vm2, %v1543_v25, 0.0 }
 0x2f9   :  { %597 = vadd.xlane.f32.xlu0 %v596_v27  ;;  %1425 = vmatmul.mubr.msk.bf16.vlgmr.msra.gmra.mrb[12].mxu1 %vm142_vm2, %v441_v24  ;;  %v750_v24 = vsel %vm653_vm3, %v636_v23, 0 }
 0x2fa   :  { %1431 = vmatmul.mubr.msk.bf16.vlgmr.msra.gmra.mrb[16].mxu0 %vm142_vm2, %v491_v26  ;;  %1436 = vmatprep.mubr.msk.bf16.mxu1 %vm1657_vm0, %v1656_v0 }
 0x2fb   :  { %v1545_v28 = vpop.eup %1544  ;;  %1442 = vmatprep.mubr.msk.bf16.mxu0 %vm1657_vm0, %v1656_v0 }
 0x2fc   :  { %v698_v29 = vpop.permute.xlu1 %697  ;;  %v608_v30 = vsel %vm142_vm2, %v1545_v28, 0.0 }
 0x2fd   :  { %v703_v31 = vsel %vm653_vm3, %v698_v29, 0  ;;  %609 = vadd.xlane.f32.xlu0 %v608_v30 }
 0x2fe   :  { %1441 = vmatpush3.bf16.msra.mxu0 %v703_v31 }
 0x2ff   :  { %1452 = vmatprep.subr.bf16.mxu0 %v1656_v0 }
 0x313   :  { %648 = vrot.lane.b32.xlu0 %v1755_v15, %s1654_s0 }
 0x32d   :  { %v565_v33 = vpop.xlane.xlu1 %564 }
 0x32e   :  { %v577_v34 = vsub.f32 %v545_v10, %v565_v33 }
 0x330   :  { %v590_v35 = vmul.f32 1.442695, %v577_v34 }
 0x331   :  { %v798_v54 = vpop.permute.xlu1 %797 }
 0x332   :  { %1546 = vpow2.f32 %v590_v35  ;;  %552 = vmax.xlane.f32.xlu0 %v551_v37  ;;  %v803_v56 = vsel %vm653_vm3, %v798_v54, 0 }
 0x336   :  { %555 = vmax.xlane.f32.xlu0 %v554_v40 }
 0x33a   :  { %567 = vmax.xlane.f32.xlu0 %v566_v41 }
 0x33c   :  { %v1856_v42 = vpop.eup %1546 }
 0x33d   :  { %v611_v43 = vsel %vm142_vm2, %v1856_v42, 0.0 }
 0x33e   :  { %612 = vadd.xlane.f32.xlu0 %v611_v43 }
 0x386   :  { %v598_v45 = vpop.xlane.xlu0 %597 }
 0x387   :  { %1548 = vrcp.f32 %v598_v45 }
 0x38a   :  { %v610_v46 = vpop.xlane.xlu0 %609 }
 0x38b   :  { %1550 = vrcp.f32 %v610_v46 }
 0x38e   :  { %v649_v47 = vpop.permute.xlu0 %648 }
 0x38f   :  { %v655_v48 = vsel %vm653_vm3, %v649_v47, 0 }
 0x390   :  { %1435 = vmatpush3.bf16.msra.mxu1 %v655_v48 }
 0x391   :  { %v1549_v49 = vpop.eup %1548  ;;  %1446 = vmatprep.subr.bf16.mxu1 %v1656_v0 }
 0x392   :  { %v628_v50 = vmul.f32 %v1549_v49, %v1543_v25 }
 0x394   :  { %v646_v51 = vpack.c.bf16 %v628_v50, %v628_v50 }
 0x395   :  { %v1551_v52 = vpop.eup %1550 }
 0x396   :  { %v632_v53 = vmul.f32 %v1551_v52, %v1545_v28  ;;  %1437 = vmatmul.mubr.msk.bf16.vlgmr.msra.gmra.mrb[16].mxu1 %vm142_vm2, %v646_v51 }
 0x397   :  { %1448 = vmatprep.mubr.msk.bf16.mxu1 %vm1657_vm0, %v1656_v0  ;;  %1447 = vmatpush3.bf16.msra.mxu1 %v750_v24 }
 0x398   :  { %v647_v55 = vpack.c.bf16 %v632_v53, %v632_v53  ;;  %1458 = vmatprep.subr.bf16.mxu1 %v1656_v0 }
 0x39a   :  { %1443 = vmatmul.mubr.msk.bf16.vlgmr.msra.gmra.mrb[20].mxu0 %vm142_vm2, %v647_v55 }
 0x39b   :  { %1453 = vmatpush3.bf16.msra.mxu0 %v803_v56  ;;  %1454 = vmatprep.mubr.msk.bf16.mxu0 %vm1657_vm0, %v1656_v0 }
 0x39c   :  { %1470 = vmatprep.subr.bf16.mxu0 %v1656_v0 }
 0x3bf   :  { %v553_v57 = vpop.xlane.xlu0 %552 }
 0x3c0   :  { %v573_v58 = vsub.f32 %v541_v32, %v553_v57 }
 0x3c2   :  { %v582_v59 = vmul.f32 1.442695, %v573_v58 }
 0x3c3   :  { %v556_v60 = vpop.xlane.xlu0 %555 }
 0x3c4   :  { %1552 = vpow2.f32 %v582_v59  ;;  %v574_v61 = vsub.f32 %v542_v36, %v556_v60 }
 0x3c6   :  { %v584_v62 = vmul.f32 1.442695, %v574_v61 }
 0x3c7   :  { %v568_v63 = vpop.xlane.xlu0 %567 }
 0x3c8   :  { %1554 = vpow2.f32 %v584_v62  ;;  %v578_v1 = vsub.f32 %v546_v38, %v568_v63 }
 0x3ca   :  { %v592_v2 = vmul.f32 1.442695, %v578_v1 }
 0x3cc   :  { %1556 = vpow2.f32 %v592_v2  ;;  %v484_v5 = vpop.f32.mrb[12].mxu1 }
 0x3cd   :  { %v534_v6 = vpop.f32.mrb[16].mxu0  ;;  %v1426_v8 = vpop.f32.mrb[13].mxu1  ;;  %v1886_v25 = vadd.f32 %v1810_v39, %v484_v5 }
 0x3ce   :  { %v1553_v10 = vpop.eup %1552  ;;  %v1432_v11 = vpop.f32.mrb[17].mxu0  ;;  %v1889_v26 = vadd.f32 %v1816_v44, %v534_v6 }
 0x3cf   :  { %v487_v12 = vpop.f32.mrb[14].mxu1  ;;  %v537_v13 = vpop.f32.mrb[18].mxu0  ;;  %v599_v16 = vsel %vm142_vm2, %v1553_v10, 0.0  ;;  %v557_v27 = vsel %vm142_vm2, %v1886_v25, -inf }
 0x3d0   :  { %v1427_v14 = vpop.f32.mrb[15].mxu1  ;;  %v1433_v17 = vpop.f32.mrb[19].mxu0  ;;  %600 = vadd.xlane.f32.xlu1 %v599_v16  ;;  %v569_v28 = vsel %vm142_vm2, %v1889_v26, -inf  ;;  %v637_v12 = vld [vmem:[%s1985_s3 + $0x4] sm:$0xf] }
 0x3d1   :  { %v613_v39 = vpop.xlane.xlu0 %612  ;;  %v898_v13 = vsel %vm653_vm3, %v637_v12, 0 }
 0x3d2   :  { %v1555_v18 = vpop.eup %1554 }
 0x3d3   :  { %v602_v20 = vsel %vm142_vm2, %v1555_v18, 0.0 }
 0x3d4   :  { %603 = vadd.xlane.f32.xlu1 %v602_v20 }
 0x3d6   :  { %v1872_v21 = vpop.eup %1556 }
 0x3d7   :  { %v614_v22 = vsel %vm142_vm2, %v1872_v21, 0.0 }
 0x3d8   :  { %615 = vadd.xlane.f32.xlu0 %v614_v22 }
 0x3e5   :  { %945 = vrot.lane.b32.xlu1 %v1755_v15, %s1666_s8 }
 0x3e9   :  { %993 = vrot.lane.b32.xlu1 %v1760_v19, %s1666_s8 }
 0x3ee   :  { %845 = vrot.lane.b32.xlu0 %v1760_v19, %s1665_s7 }
 0x40d   :  { %558 = vmax.xlane.f32.xlu0 %v557_v27  ;;  %570 = vmax.xlane.f32.xlu1 %v569_v28 }
 0x41e   :  { %1093 = vrot.lane.b32.xlu1 %v1755_v15, %s1667_s11 }
 0x45d   :  { %v601_v29 = vpop.xlane.xlu1 %600 }
 0x45e   :  { %1558 = vrcp.f32 %v601_v29 }
 0x461   :  { %v604_v30 = vpop.xlane.xlu1 %603 }
 0x462   :  { %1560 = vrcp.f32 %v604_v30 }
 0x463   :  { %1562 = vrcp.f32 %v613_v39 }
 0x465   :  { %v616_v44 = vpop.xlane.xlu0 %615  ;;  %v946_v34 = vpop.permute.xlu1 %945 }
 0x466   :  { %1564 = vrcp.f32 %v616_v44  ;;  %v951_v41 = vsel %vm653_vm3, %v946_v34, 0 }
 0x468   :  { %v1559_v31 = vpop.eup %1558 }
 0x469   :  { %v629_v32 = vmul.f32 %v1559_v31, %v1553_v10  ;;  %v691_v33 = vpop.f32.mrb[16].mxu1  ;;  %v846_v15 = vpop.permute.xlu0 %845 }
 0x46a   :  { %v1438_v35 = vpop.f32.mrb[17].mxu1  ;;  %v851_v50 = vsel %vm653_vm3, %v846_v15, 0  ;;  %v994_v53 = vpop.permute.xlu1 %993 }
 0x46b   :  { %v694_v36 = vpop.f32.mrb[18].mxu1  ;;  %v795_v37 = vpack.c.bf16 %v629_v32, %v629_v32  ;;  %v999_v56 = vsel %vm653_vm3, %v994_v53, 0 }
 0x46c   :  { %v1561_v38 = vpop.eup %1560  ;;  %v1439_v40 = vpop.f32.mrb[19].mxu1 }
 0x46d   :  { %v739_v43 = vpop.f32.mrb[20].mxu0  ;;  %1455 = vmatmul.mubr.msk.bf16.vlgmr.msra.gmra.mrb[24].mxu0 %vm142_vm2, %v795_v37  ;;  %v1563_v47 = vpop.eup %1562  ;;  %v630_v48 = vmul.f32 %v1561_v38, %v1555_v18 }
 0x46e   :  { %v745_v45 = vpack.c.bf16 %v739_v43, %v691_v33  ;;  %1471 = vmatpush3.bf16.msra.mxu0 %v951_v41  ;;  %v1444_v46 = vpop.f32.mrb[21].mxu0  ;;  %1472 = vmatprep.mubr.msk.bf16.mxu0 %vm1657_vm0, %v1656_v0  ;;  %v633_v52 = vmul.f32 %v1563_v47, %v1856_v42 }
 0x46f   :  { %v742_v49 = vpop.f32.mrb[22].mxu0  ;;  %1476 = vmatprep.subr.bf16.mxu0 %v1656_v0  ;;  %v943_v54 = vpack.c.bf16 %v630_v48, %v630_v48 }
 0x470   :  { %v1445_v51 = vpop.f32.mrb[23].mxu0  ;;  %1449 = vmatmul.mubr.msk.bf16.vlgmr.msra.gmra.mrb[20].mxu1 %vm142_vm2, %v745_v45  ;;  %v1565_v55 = vpop.eup %1564  ;;  %v796_v57 = vpack.c.bf16 %v633_v52, %v633_v52  ;;  %v639_v45 = vld [vmem:[%s1985_s3 + $0xc] sm:$0xf] }
 0x471   :  { %1459 = vmatpush3.bf16.msra.mxu1 %v851_v50  ;;  %1460 = vmatprep.mubr.msk.bf16.mxu1 %vm1657_vm0, %v1656_v0  ;;  %v634_v58 = vmul.f32 %v1565_v55, %v1872_v21  ;;  %v1194_v46 = vsel %vm653_vm3, %v639_v45, 0 }
 0x472   :  { %1464 = vmatprep.subr.bf16.mxu1 %v1656_v0 }
 0x473   :  { %v944_v42 = vpack.c.bf16 %v634_v58, %v634_v58 }
 0x475   :  { %1473 = vmatmul.mubr.msk.bf16.vlgmr.msra.gmra.mrb[28].mxu0 %vm142_vm2, %v943_v54 }
 0x476   :  { %1477 = vmatpush3.bf16.msra.mxu0 %v999_v56  ;;  %1478 = vmatprep.mubr.msk.bf16.mxu0 %vm1657_vm0, %v1656_v0 }
 0x477   :  { %1488 = vmatprep.subr.bf16.mxu0 %v1656_v0 }
 0x478   :  { %1461 = vmatmul.mubr.msk.bf16.vlgmr.msra.gmra.mrb[24].mxu1 %vm142_vm2, %v796_v57 }
 0x479   :  { %1466 = vmatprep.mubr.msk.bf16.mxu1 %vm1657_vm0, %v1656_v0  ;;  %1465 = vmatpush3.bf16.msra.mxu1 %v898_v13 }
 0x47a   :  { %1482 = vmatprep.subr.bf16.mxu1 %v1656_v0 }
 0x47d   :  { %1479 = vmatmul.mubr.msk.bf16.vlgmr.msra.gmra.mrb[32].mxu0 %vm142_vm2, %v944_v42 }
 0x47e   :  { %1490 = vmatprep.mubr.msk.bf16.mxu0 %vm1657_vm0, %v1656_v0 }
 0x49a   :  { %v559_v59 = vpop.xlane.xlu0 %558  ;;  %v571_v60 = vpop.xlane.xlu1 %570 }
 0x49b   :  { %v575_v61 = vsub.f32 %v1886_v25, %v559_v59  ;;  %v579_v62 = vsub.f32 %v1889_v26, %v571_v60  ;;  %v638_v25 = vld [vmem:[%s1985_s3 + $0x8] sm:$0xf]  ;;  %s1668_s3 = smov 32  }
 0x49c   :  { %v1046_v44 = vsel %vm653_vm3, %v638_v25, 0 }
 0x49d   :  { %v586_v63 = vmul.f32 1.442695, %v575_v61  ;;  %v594_v1 = vmul.f32 1.442695, %v579_v62 }
 0x49e   :  { %v1094_v2 = vpop.permute.xlu1 %1093 }
 0x49f   :  { %1566 = vpow2.f32 %v586_v63  ;;  %v1099_v5 = vsel %vm653_vm3, %v1094_v2, 0 }
 0x4a0   :  { %1489 = vmatpush3.bf16.msra.mxu0 %v1099_v5  ;;  %1568 = vpow2.f32 %v594_v1 }
 0x4a9   :  { %v1567_v6 = vpop.eup %1566 }
 0x4aa   :  { %v605_v8 = vsel %vm142_vm2, %v1567_v6, 0.0  ;;  %v1569_v10 = vpop.eup %1568 }
 0x4ab   :  { %606 = vadd.xlane.f32.xlu0 %v605_v8  ;;  %v617_v11 = vsel %vm142_vm2, %v1569_v10, 0.0 }
 0x4af   :  { %618 = vadd.xlane.f32.xlu0 %v617_v11 }
 0x4c5   :  { %1141 = vrot.lane.b32.xlu0 %v1760_v19, %s1667_s11 }
 0x538   :  { %v607_v14 = vpop.xlane.xlu0 %606 }
 0x539   :  { %1570 = vrcp.f32 %v607_v14 }
 0x53c   :  { %v619_v29 = vpop.xlane.xlu0 %618 }
 0x53d   :  { %1572 = vrcp.f32 %v619_v29 }
 0x540   :  { %v839_v16 = vpop.f32.mrb[24].mxu0  ;;  %v1142_v38 = vpop.permute.xlu0 %1141 }
 0x541   :  { %v1456_v17 = vpop.f32.mrb[25].mxu0  ;;  %v1147_v41 = vsel %vm653_vm3, %v1142_v38, 0 }
 0x542   :  { %v842_v18 = vpop.f32.mrb[26].mxu0 }
 0x543   :  { %v1571_v20 = vpop.eup %1570  ;;  %v1457_v21 = vpop.f32.mrb[27].mxu0 }
 0x544   :  { %v631_v22 = vmul.f32 %v1571_v20, %v1567_v6 }
 0x546   :  { %v1091_v23 = vpack.c.bf16 %v631_v22, %v631_v22 }
 0x547   :  { %v1573_v40 = vpop.eup %1572 }
 0x548   :  { %v987_v24 = vpop.f32.mrb[28].mxu0  ;;  %1491 = vmatmul.mubr.msk.bf16.vlgmr.msra.gmra.mrb[36].mxu0 %vm142_vm2, %v1091_v23  ;;  %v635_v15 = vmul.f32 %v1573_v40, %v1569_v10 }
 0x549   :  { %v1474_v19 = vpop.f32.mrb[29].mxu0 }
 0x54a   :  { %v990_v26 = vpop.f32.mrb[30].mxu0  ;;  %v1092_v43 = vpack.c.bf16 %v635_v15, %v635_v15 }
 0x54b   :  { %v887_v27 = vpop.f32.mrb[24].mxu1  ;;  %v1475_v28 = vpop.f32.mrb[31].mxu0 }
 0x54c   :  { %v893_v30 = vpack.c.bf16 %v887_v27, %v839_v16  ;;  %v1462_v39 = vpop.f32.mrb[25].mxu1 }
 0x54d   :  { %v890_v31 = vpop.f32.mrb[26].mxu1 }
 0x54e   :  { %v1463_v32 = vpop.f32.mrb[27].mxu1  ;;  %1467 = vmatmul.mubr.msk.bf16.vlgmr.msra.gmra.mrb[20].mxu1 %vm142_vm2, %v893_v30 }
 0x54f   :  { %1483 = vmatpush3.bf16.msra.mxu1 %v1046_v44  ;;  %1484 = vmatprep.mubr.msk.bf16.mxu1 %vm1657_vm0, %v1656_v0 }
 0x550   :  { %v1035_v33 = vpop.f32.mrb[32].mxu0  ;;  %1494 = vmatprep.subr.bf16.mxu1 %v1656_v0 }
 0x551   :  { %v1041_v34 = vpack.c.bf16 %v1035_v33, %v987_v24  ;;  %v1480_v35 = vpop.f32.mrb[33].mxu0 }
 0x552   :  { %v1038_v36 = vpop.f32.mrb[34].mxu0 }
 0x553   :  { %v1481_v37 = vpop.f32.mrb[35].mxu0 }
 0x55a   :  { %1485 = vmatmul.mubr.msk.bf16.vlgmr.msra.gmra.mrb[20].mxu1 %vm142_vm2, %v1041_v34 }
 0x55b   :  { %1495 = vmatpush3.bf16.msra.mxu1 %v1147_v41  ;;  %1496 = vmatprep.mubr.msk.bf16.mxu1 %vm1657_vm0, %v1656_v0 }
 0x55c   :  { %1500 = vmatprep.subr.bf16.mxu1 %v1656_v0 }
 0x562   :  { %1497 = vmatmul.mubr.msk.bf16.vlgmr.msra.gmra.mrb[28].mxu1 %vm142_vm2, %v1092_v43 }
 0x563   :  { %1502 = vmatprep.mubr.msk.bf16.mxu1 %vm1657_vm0, %v1656_v0  ;;  %1501 = vmatpush3.bf16.msra.mxu1 %v1194_v46  ;;  %v642_v0 = vsub.s32 1, %v1746_v7 }
 0x565   :  { %v643_v56 = vrot.slane %v1752_v9, %v642_v0 }
 0x567   :  { %v644_v57 = vadd.f32 %v643_v56, %v1735_v3  ;;  %v645_v58 = vadd.f32 %v643_v56, %v1737_v4 }
 0x61b   :  { %v1135_v47 = vpop.f32.mrb[36].mxu0 }
 0x61c   :  { %v1492_v48 = vpop.f32.mrb[37].mxu0 }
 0x61d   :  { %v1138_v49 = vpop.f32.mrb[38].mxu0 }
 0x61e   :  { %v1493_v50 = vpop.f32.mrb[39].mxu0 }
 0x635   :  { %v1183_v51 = vpop.f32.mrb[28].mxu1 }
 0x636   :  { %v1189_v52 = vpack.c.bf16 %v1183_v51, %v1135_v47  ;;  %v1498_v53 = vpop.f32.mrb[29].mxu1 }
 0x637   :  { %v1186_v54 = vpop.f32.mrb[30].mxu1 }
 0x638   :  { %v1499_v55 = vpop.f32.mrb[31].mxu1  ;;  %1503 = vmatmul.mubr.msk.bf16.vlgmr.msra.gmra.mrb[20].mxu1 %vm142_vm2, %v1189_v52 }
 0x70b   :  { %v1230_v42 = vpop.f32.mrb[20].mxu1 }
 0x70c   :  { %v1506_v59 = vadd.f32 %v1230_v42, %v644_v57  ;;  %v1504_v60 = vpop.f32.mrb[21].mxu1 }
 0x70d   :  { %v1233_v61 = vpop.f32.mrb[22].mxu1 }
 0x70e   :  { %v1507_v62 = vadd.f32 %v1233_v61, %v645_v58  ;;  %v1505_v63 = vpop.f32.mrb[23].mxu1  ;;  %v1239_v1 = vsel %vm74_vm1, %v1506_v59, 0.0 }
 0x70f   :  { %1240 = vadd.xlane.f32.xlu1 %v1239_v1 }
 0x710   :  { %v1242_v2 = vsel %vm74_vm1, %v1507_v62, 0.0 }
 0x711   :  { %1243 = vadd.xlane.f32.xlu0 %v1242_v2 }
 0x79c   :  { %v1241_v5 = vpop.xlane.xlu1 %1240 }
 0x79d   :  { %v1246_v7 = vmul.f32 0.03125, %v1241_v5 }
 0x79e   :  { %v1244_v6 = vpop.xlane.xlu0 %1243 }
 0x79f   :  { %v1248_v9 = vsub.f32 %v1506_v59, %v1246_v7  ;;  %v1247_v8 = vmul.f32 0.03125, %v1244_v6 }
 0x7a1   :  { %v1249_v3 = vsub.f32 %v1507_v62, %v1247_v8  ;;  %v1250_v10 = vmul.f32 %v1248_v9, %v1248_v9 }
 0x7a3   :  { %v1252_v4 = vsel %vm74_vm1, %v1250_v10, 0.0  ;;  %v1251_v11 = vmul.f32 %v1249_v3, %v1249_v3 }
 0x7a4   :  { %1253 = vadd.xlane.f32.xlu1 %v1252_v4 }
 0x7a5   :  { %v1255_v12 = vsel %vm74_vm1, %v1251_v11, 0.0 }
 0x7a6   :  { %1256 = vadd.xlane.f32.xlu0 %v1255_v12 }
 0x831   :  { %v1254_v13 = vpop.xlane.xlu1 %1253 }
 0x832   :  { %v1258_v14 = vmul.f32 0.03125, %v1254_v13 }
 0x833   :  { %v1257_v16 = vpop.xlane.xlu0 %1256 }
 0x834   :  { %v1260_v17 = vadd.f32 1e-12, %v1258_v14  ;;  %v1259_v18 = vmul.f32 0.03125, %v1257_v16 }
 0x836   :  { %1574 = vrsqrt.f32 %v1260_v17  ;;  %v1261_v20 = vadd.f32 1e-12, %v1259_v18 }
 0x838   :  { %1576 = vrsqrt.f32 %v1261_v20 }
 0x840   :  { %v1575_v21 = vpop.eup %1574 }
 0x841   :  { %v1264_v22 = vmul.f32 %v1575_v21, %v1248_v9 }
 0x842   :  { %v1577_v23 = vpop.eup %1576 }
 0x843   :  { %1268 = vrot.lane.b32.xlu1 %v1264_v22, %s1668_s3  ;;  %v1265_v24 = vmul.f32 %v1577_v23, %v1249_v3 }
 0x845   :  { %1270 = vrot.lane.b32.xlu0 %v1265_v24, %s1668_s3 }
 0x847   :  { %1277 = vrot.lane.b32.xlu1 %v643_v56, %s1659_s22 }
 0x8b5   :  { %v1269_v19 = vpop.permute.xlu1 %1268 }
 0x8b6   :  { %v1274_v26 = vmul.f32 %v1269_v19, %v643_v56 }
 0x8b7   :  { %v1271_v25 = vpop.permute.xlu0 %1270 }
 0x8b8   :  { %v1275_v27 = vmul.f32 %v1271_v25, %v643_v56 }
 0x8b9   :  { %v1278_v28 = vpop.permute.xlu1 %1277 }
 0x8ba   :  { %v1280_v29 = vadd.f32 %v1278_v28, %v1274_v26  ;;  %v1281_v30 = vadd.f32 %v1278_v28, %v1275_v27 }
 0x8bc   :  { %1284 = vrot.lane.b32.xlu1 %v1280_v29, %s1659_s22  ;;  %1286 = vrot.lane.b32.xlu0 %v1281_v30, %s1659_s22 }
 0x92e   :  { %v1285_v39 = vpop.permute.xlu1 %1284  ;;  %v1287_v44 = vpop.permute.xlu0 %1286 }
 0x92f   :  { %1290 = vst.msk [vmem:[#allocation7] sm:$0xff] %vm74_vm1, %v1285_v39  ;;  %1291 = vst.msk [vmem:[#allocation7 + $0x8] sm:$0xff] %vm74_vm1, %v1287_v44 }
 0x930   :  { %1633 = shalt.err (!%p1630_p6)
}
 0x931   :  { %s1634_s21 = scalar_lea.hbm %s1987_s5, 256 }
 0x932   :  { %p1635_p7 = scmp.ne.s32.totalorder %s1987_s5, %s1634_s21  ;;  %p1638_p8 = scmp.lt.u32.totalorder %s1634_s21, %s1987_s5 }
 0x934   :  { %p1640_p9 = pnand %p1638_p8, %p1635_p7 }
 0x936   :  { %1643 = shalt.err (!%p1640_p9)
}
 0x937   :  { %1303 = dma.vmem_to_hbm [thread:$0]  %s1298_s18, 256, %s1987_s5, [#allocation4], %s1651_s28, %s1651_s28, %s1652_s29  }
 0x938   :  { %1648 = dma.done.wait [#allocation4], 256  }
 0x939   :  { %1649 = vsyncadd [#allocation4], 4294967040 }
 0x93a   :  { %1307 = vsyncpa [#allocation3], 1 }
 0x93b   :  { %1308 = vsyncpa [#allocation6], 1 }
 0x93c   :  { %1309 = vsyncpa [#allocation4], 1 }

</bundles_post_ra>
